<compile_context>
chip_gen: v7x
topology: tpu7x:2x2x1
jax: 0.10.0
libtpu: 0.0.40
codegen_flags: <defaults>
</compile_context>

<pallas_src>
import jax
import jax.numpy as jnp
from jax.experimental import pallas as pl
from jax.experimental.pallas import tpu as pltpu

EPS = 0.003
LEAKY_SLOPE = 0.01          # nn.LeakyReLU default
PACK = 8                    # batch rows packed per sublane-row (lane-dense layout)
TILE_B_CAP = 16384          # max batch rows per grid step


def _leaky_relu(x):
    return jnp.where(x > 0, x, LEAKY_SLOPE * x)


def _round_up(x, m):
    return (x + m - 1) // m * m


def _choose_tile_b(n):
    """Batch rows per grid step: big tiles to amortize the ~0.35us/step
    overhead, >=2 blocks (batches > 128) so v7x's two TCs both get work,
    blocks balanced so padding waste stays small."""
    n = max(int(n), 1)
    if n <= 128:
        return _round_up(n, PACK)
    n_blocks = max(2, pl.cdiv(n, TILE_B_CAP))
    return min(TILE_B_CAP, _round_up(pl.cdiv(n, n_blocks), 128))


# --------------------------------------------------------------------------- #
# Kernel
# --------------------------------------------------------------------------- #
def critic_kernel(sp_ref, ap_ref, w_ref, b_ref, out_ref):
    """One batch tile of the Critic forward pass in packed-batch layout.

    sp_ref  : (Bp, PACK*state_dim)   -- PACK states interleaved per row
    ap_ref  : (Bp, PACK*action_dim)  -- PACK actions interleaved per row
    w_ref   : (R, 128)               -- packed block-diagonal weight slab
    b_ref   : (40, 128)              -- packed (tiled) bias slab
    out_ref : (1, Bp, PACK)          -- Q values, row r lane q = batch r*PACK+q
    """
    ds = sp_ref.shape[-1] // PACK
    da = ap_ref.shape[-1] // PACK

    # Static row offsets of each block-diagonal weight inside the slab.
    r1 = PACK * ds          # end of kron(I, W_fcs1.T)
    r2 = r1 + PACK * da     # end of kron(I, W_fca1.T)
    r3 = r2 + PACK * 16     # end of kron(I, W_fcs2.T)
    r4 = r3 + PACK * 8      # end of kron(I, W_fc2[:, :8].T)
    r5 = r4 + PACK * 8      # end of kron(I, W_fc2[:, 8:].T)

    sp = sp_ref[...]                               # (Bp, PACK*ds)
    ap = ap_ref[...]                               # (Bp, PACK*da)

    w1  = w_ref[0:r1, 0:PACK * 16]                 # (PACK*ds, 128)
    wa  = w_ref[r1:r2, 0:PACK * 8]                 # (PACK*da, 64)
    w2  = w_ref[r2:r3, 0:PACK * 8]                 # (128, 64)
    w2s = w_ref[r3:r4, 0:PACK * 16]                # (64, 128)
    w2a = w_ref[r4:r5, 0:PACK * 16]                # (64, 128)
    w3  = w_ref[r5:r5 + PACK * 16, 0:PACK]         # (128, 8)

    b1  = b_ref[0:1, 0:PACK * 16]                  # tiled b_fcs1
    ba  = b_ref[8:9, 0:PACK * 8]                   # tiled b_fca1
    b2  = b_ref[16:17, 0:PACK * 8]                 # tiled b_fcs2
    bf2 = b_ref[24:25, 0:PACK * 16]                # tiled b_fc2
    b3  = b_ref[32:33, 0:PACK]                     # tiled b_fc3

    # All dots are canonical (B,K)@(K,N); activations stay lane-dense.
    s1 = _leaky_relu(jnp.dot(sp, w1, preferred_element_type=jnp.float32) + b1)   # (Bp,128)
    a1 = _leaky_relu(jnp.dot(ap, wa, preferred_element_type=jnp.float32) + ba)   # (Bp, 64)
    s2 = _leaky_relu(jnp.dot(s1, w2, preferred_element_type=jnp.float32) + b2)   # (Bp, 64)
    # cat([s2, a1]) @ W_fc2.T  ==  s2 @ W_fc2[:, :8].T + a1 @ W_fc2[:, 8:].T
    x = _leaky_relu(jnp.dot(s2, w2s, preferred_element_type=jnp.float32)
                    + jnp.dot(a1, w2a, preferred_element_type=jnp.float32) + bf2)  # (Bp,128)
    q = jnp.dot(x, w3, preferred_element_type=jnp.float32) + b3                    # (Bp, 8)

    out_ref[...] = q[None]                                                         # (1,Bp,8)


# --------------------------------------------------------------------------- #
# Parameters: init (PyTorch layout/init) and packing into slabs
# --------------------------------------------------------------------------- #
def init_critic_params(key, state_dim, action_dim):
    """Mirrors nn.Linear default init (U(-1/sqrt(fan_in), 1/sqrt(fan_in)));
    fc3.weight ~ U(-EPS, EPS). Weights stored PyTorch-style [out, in]."""
    def linear(k, fan_in, fan_out, w_bound=None):
        kw, kb = jax.random.split(k)
        bound = float(fan_in) ** -0.5
        wb = bound if w_bound is None else w_bound
        w = jax.random.uniform(kw, (fan_out, fan_in), jnp.float32, -wb, wb)
        b = jax.random.uniform(kb, (fan_out,), jnp.float32, -bound, bound)
        return w, b

    k1, k2, k3, k4, k5 = jax.random.split(key, 5)
    w_s1, b_s1 = linear(k1, state_dim, 16)
    w_s2, b_s2 = linear(k2, 16, 8)
    w_a1, b_a1 = linear(k3, action_dim, 8)
    w_fc2, b_fc2 = linear(k4, 16, 16)
    w_fc3, b_fc3 = linear(k5, 16, 1, w_bound=EPS)
    return dict(w_s1=w_s1, b_s1=b_s1, w_s2=w_s2, b_s2=b_s2, w_a1=w_a1, b_a1=b_a1,
                w_fc2=w_fc2, b_fc2=b_fc2, w_fc3=w_fc3, b_fc3=b_fc3)


def pack_critic_params(params):
    """Pack block-diagonal (kron(I_PACK, W.T)) weights into one (R,128) slab
    and tiled biases into a (40,128) slab."""
    eye = jnp.eye(PACK, dtype=jnp.float32)
    blocks = [
        jnp.kron(eye, params["w_s1"].T),           # (PACK*ds, 128)
        jnp.kron(eye, params["w_a1"].T),           # (PACK*da,  64)
        jnp.kron(eye, params["w_s2"].T),           # (128,      64)
        jnp.kron(eye, params["w_fc2"][:, :8].T),   # (64,      128)
        jnp.kron(eye, params["w_fc2"][:, 8:].T),   # (64,      128)
        jnp.kron(eye, params["w_fc3"].T),          # (128,       8)
    ]
    rows = sum(blk.shape[0] for blk in blocks)
    w = jnp.zeros((rows, 128), jnp.float32)
    r = 0
    for blk in blocks:
        w = w.at[r:r + blk.shape[0], 0:blk.shape[1]].set(blk)
        r += blk.shape[0]

    b = jnp.zeros((40, 128), jnp.float32)
    b = b.at[0, 0:PACK * 16].set(jnp.tile(params["b_s1"], PACK))
    b = b.at[8, 0:PACK * 8].set(jnp.tile(params["b_a1"], PACK))
    b = b.at[16, 0:PACK * 8].set(jnp.tile(params["b_s2"], PACK))
    b = b.at[24, 0:PACK * 16].set(jnp.tile(params["b_fc2"], PACK))
    b = b.at[32, 0:PACK].set(jnp.tile(params["b_fc3"], PACK))
    return w, b


# --------------------------------------------------------------------------- #
# Wrapper
# --------------------------------------------------------------------------- #
@jax.jit
def critic_forward(state, action, wslab, bslab):
    n, ds = state.shape
    da = action.shape[1]
    assert wslab.shape == (PACK * (ds + da) + 48 * PACK, 128), wslab.shape
    assert bslab.shape == (40, 128), bslab.shape

    tile_b = _choose_tile_b(n)
    n_blocks = pl.cdiv(n, tile_b)
    n_pad = n_blocks * tile_b
    if n_pad != n:
        # Only when the batch is not a multiple of the tile (kept for
        # guaranteed-correct handling of the partial last block).
        state = jnp.pad(state, ((0, n_pad - n), (0, 0)))
        action = jnp.pad(action, ((0, n_pad - n), (0, 0)))

    tile_rows = tile_b // PACK
    # Row-major metadata reshape (free): PACK batch rows per sublane-row.
    sp = state.reshape(n_pad // PACK, PACK * ds)
    ap = action.reshape(n_pad // PACK, PACK * da)

    out = pl.pallas_call(
        critic_kernel,
        out_shape=jax.ShapeDtypeStruct((n_blocks, tile_rows, PACK), jnp.float32),
        grid=(n_blocks,),
        in_specs=[
            pl.BlockSpec((tile_rows, PACK * ds), lambda i: (i, 0)),   # packed states
            pl.BlockSpec((tile_rows, PACK * da), lambda i: (i, 0)),   # packed actions
            pl.BlockSpec(wslab.shape, lambda i: (0, 0)),              # weight slab (resident)
            pl.BlockSpec(bslab.shape, lambda i: (0, 0)),              # bias slab (resident)
        ],
        out_specs=pl.BlockSpec((1, tile_rows, PACK), lambda i: (i, 0, 0)),
        compiler_params=pltpu.CompilerParams(
            dimension_semantics=("parallel",),        # megacore sharding on v7x
            vmem_limit_bytes=32 * 1024 * 1024,        # > v5e default, < v7x physical
        ),
    )(sp, ap, wslab, bslab)

    return out.reshape(n_pad, 1)[:n]


def critic_forward_ref(state, action, p):
    """Pure-JAX reference for correctness checking."""
    s1 = _leaky_relu(state @ p["w_s1"].T + p["b_s1"])
    s2 = _leaky_relu(s1 @ p["w_s2"].T + p["b_s2"])
    a1 = _leaky_relu(action @ p["w_a1"].T + p["b_a1"])
    x = jnp.concatenate([s2, a1], axis=1)
    x = _leaky_relu(x @ p["w_fc2"].T + p["b_fc2"])
    return x @ p["w_fc3"].T + p["b_fc3"]


if __name__ == "__main__":
    key = jax.random.PRNGKey(0)
    k_param, k_data = jax.random.split(key)

    state_dim, action_dim = 12, 4
    params = init_critic_params(k_param, state_dim, action_dim)
    wslab, bslab = pack_critic_params(params)

    # batch=8: single tiny block; batch=300: multi-block + padded-tail path.
    for batch in (8, 300):
        ks, ka = jax.random.split(jax.random.fold_in(k_data, batch))
        state = jax.random.normal(ks, (batch, state_dim), jnp.float32)
        action = jax.random.normal(ka, (batch, action_dim), jnp.float32)

        q = jax.block_until_ready(critic_forward(state, action, wslab, bslab))

        with jax.default_matmul_precision("highest"):
            q_ref = critic_forward_ref(state, action, params)

        assert q.shape == (batch, 1), q.shape
        # Loose tolerance: kernel matmuls run at default MXU precision
        # (bf16-pass emulation of f32); a packing bug would be off by O(0.1+).
        assert jnp.allclose(q, q_ref, atol=1e-2, rtol=1e-2), (
            batch, float(jnp.max(jnp.abs(q - q_ref))))

    print("KERNEL_OK")
</pallas_src>

<mosaic_0001>
module attributes {stable_mosaic.version = 11 : i64} {
  func.func @critic_kernel(%arg0: i32, %arg1: memref<1x96xf32, #tpu.memory_space<vmem>>, %arg2: memref<1x32xf32, #tpu.memory_space<vmem>>, %arg3: memref<512x128xf32, #tpu.memory_space<vmem>>, %arg4: memref<40x128xf32, #tpu.memory_space<vmem>>, %arg5: memref<1x1x8xf32, #tpu.memory_space<vmem>>) attributes {dimension_semantics = [#tpu.dimension_semantics<parallel>], iteration_bounds = array<i64: 1>, scalar_prefetch = 0 : i64, scratch_operands = 0 : i64, tpu.core_type = #tpu.core_type<tc>, window_params = [{transform_indices = @transform_0, window_bounds = array<i64: 1, 96>}, {transform_indices = @transform_1, window_bounds = array<i64: 1, 32>}, {pipeline_mode = #tpu.pipeline_mode<synchronous>, transform_indices = @transform_2, window_bounds = array<i64: 512, 128>}, {pipeline_mode = #tpu.pipeline_mode<synchronous>, transform_indices = @transform_3, window_bounds = array<i64: 40, 128>}, {transform_indices = @transform_4, window_bounds = array<i64: 1, 1, 8>}]} {
    %c0 = arith.constant 0 : index
    %c0_0 = arith.constant 0 : index
    %0 = vector.load %arg1[%c0, %c0_0] : memref<1x96xf32, #tpu.memory_space<vmem>>, vector<1x96xf32>
    %c0_1 = arith.constant 0 : index
    %c0_2 = arith.constant 0 : index
    %1 = vector.load %arg2[%c0_1, %c0_2] : memref<1x32xf32, #tpu.memory_space<vmem>>, vector<1x32xf32>
    %c0_3 = arith.constant 0 : index
    %c0_4 = arith.constant 0 : index
    %2 = vector.load %arg3[%c0_3, %c0_4] : memref<512x128xf32, #tpu.memory_space<vmem>>, vector<96x128xf32>
    %c96 = arith.constant 96 : index
    %c0_5 = arith.constant 0 : index
    %3 = vector.load %arg3[%c96, %c0_5] : memref<512x128xf32, #tpu.memory_space<vmem>>, vector<32x64xf32>
    %c128 = arith.constant 128 : index
    %c0_6 = arith.constant 0 : index
    %4 = vector.load %arg3[%c128, %c0_6] : memref<512x128xf32, #tpu.memory_space<vmem>>, vector<128x64xf32>
    %c256 = arith.constant 256 : index
    %c0_7 = arith.constant 0 : index
    %5 = vector.load %arg3[%c256, %c0_7] : memref<512x128xf32, #tpu.memory_space<vmem>>, vector<64x128xf32>
    %c320 = arith.constant 320 : index
    %c0_8 = arith.constant 0 : index
    %6 = vector.load %arg3[%c320, %c0_8] : memref<512x128xf32, #tpu.memory_space<vmem>>, vector<64x128xf32>
    %c384 = arith.constant 384 : index
    %c0_9 = arith.constant 0 : index
    %7 = vector.load %arg3[%c384, %c0_9] : memref<512x128xf32, #tpu.memory_space<vmem>>, vector<128x8xf32>
    %c0_10 = arith.constant 0 : index
    %c0_11 = arith.constant 0 : index
    %8 = vector.load %arg4[%c0_10, %c0_11] : memref<40x128xf32, #tpu.memory_space<vmem>>, vector<1x128xf32>
    %c8 = arith.constant 8 : index
    %c0_12 = arith.constant 0 : index
    %9 = vector.load %arg4[%c8, %c0_12] : memref<40x128xf32, #tpu.memory_space<vmem>>, vector<1x64xf32>
    %c16 = arith.constant 16 : index
    %c0_13 = arith.constant 0 : index
    %10 = vector.load %arg4[%c16, %c0_13] : memref<40x128xf32, #tpu.memory_space<vmem>>, vector<1x64xf32>
    %c24 = arith.constant 24 : index
    %c0_14 = arith.constant 0 : index
    %11 = vector.load %arg4[%c24, %c0_14] : memref<40x128xf32, #tpu.memory_space<vmem>>, vector<1x128xf32>
    %c32 = arith.constant 32 : index
    %c0_15 = arith.constant 0 : index
    %12 = vector.load %arg4[%c32, %c0_15] : memref<40x128xf32, #tpu.memory_space<vmem>>, vector<1x8xf32>
    %cst = arith.constant dense<0.000000e+00> : vector<1x128xf32>
    %13 = tpu.matmul %0, %2, %cst {dimension_numbers = #tpu.dot_dimension_numbers<[1], [0], [0], [1], [0, 0, 1, 1], [], []>} : vector<1x96xf32>, vector<96x128xf32>, vector<1x128xf32> -> vector<1x128xf32>
    %14 = arith.addf %13, %8 : vector<1x128xf32>
    %cst_16 = arith.constant 0.000000e+00 : f32
    %15 = vector.broadcast %cst_16 : f32 to vector<1x128xf32>
    %16 = arith.cmpf ogt, %14, %15 : vector<1x128xf32>
    %cst_17 = arith.constant 0.00999999977 : f32
    %17 = vector.broadcast %cst_17 : f32 to vector<1x128xf32>
    %18 = arith.mulf %17, %14 : vector<1x128xf32>
    %19 = arith.select %16, %14, %18 : vector<1x128xi1>, vector<1x128xf32>
    %cst_18 = arith.constant dense<0.000000e+00> : vector<1x64xf32>
    %20 = tpu.matmul %1, %3, %cst_18 {dimension_numbers = #tpu.dot_dimension_numbers<[1], [0], [0], [1], [0, 0, 1, 1], [], []>} : vector<1x32xf32>, vector<32x64xf32>, vector<1x64xf32> -> vector<1x64xf32>
    %21 = arith.addf %20, %9 : vector<1x64xf32>
    %cst_19 = arith.constant 0.000000e+00 : f32
    %22 = vector.broadcast %cst_19 : f32 to vector<1x64xf32>
    %23 = arith.cmpf ogt, %21, %22 : vector<1x64xf32>
    %cst_20 = arith.constant 0.00999999977 : f32
    %24 = vector.broadcast %cst_20 : f32 to vector<1x64xf32>
    %25 = arith.mulf %24, %21 : vector<1x64xf32>
    %26 = arith.select %23, %21, %25 : vector<1x64xi1>, vector<1x64xf32>
    %cst_21 = arith.constant dense<0.000000e+00> : vector<1x64xf32>
    %27 = tpu.matmul %19, %4, %cst_21 {dimension_numbers = #tpu.dot_dimension_numbers<[1], [0], [0], [1], [0, 0, 1, 1], [], []>} : vector<1x128xf32>, vector<128x64xf32>, vector<1x64xf32> -> vector<1x64xf32>
    %28 = arith.addf %27, %10 : vector<1x64xf32>
    %cst_22 = arith.constant 0.000000e+00 : f32
    %29 = vector.broadcast %cst_22 : f32 to vector<1x64xf32>
    %30 = arith.cmpf ogt, %28, %29 : vector<1x64xf32>
    %cst_23 = arith.constant 0.00999999977 : f32
    %31 = vector.broadcast %cst_23 : f32 to vector<1x64xf32>
    %32 = arith.mulf %31, %28 : vector<1x64xf32>
    %33 = arith.select %30, %28, %32 : vector<1x64xi1>, vector<1x64xf32>
    %cst_24 = arith.constant dense<0.000000e+00> : vector<1x128xf32>
    %34 = tpu.matmul %33, %5, %cst_24 {dimension_numbers = #tpu.dot_dimension_numbers<[1], [0], [0], [1], [0, 0, 1, 1], [], []>} : vector<1x64xf32>, vector<64x128xf32>, vector<1x128xf32> -> vector<1x128xf32>
    %cst_25 = arith.constant dense<0.000000e+00> : vector<1x128xf32>
    %35 = tpu.matmul %26, %6, %cst_25 {dimension_numbers = #tpu.dot_dimension_numbers<[1], [0], [0], [1], [0, 0, 1, 1], [], []>} : vector<1x64xf32>, vector<64x128xf32>, vector<1x128xf32> -> vector<1x128xf32>
    %36 = arith.addf %34, %35 : vector<1x128xf32>
    %37 = arith.addf %36, %11 : vector<1x128xf32>
    %cst_26 = arith.constant 0.000000e+00 : f32
    %38 = vector.broadcast %cst_26 : f32 to vector<1x128xf32>
    %39 = arith.cmpf ogt, %37, %38 : vector<1x128xf32>
    %cst_27 = arith.constant 0.00999999977 : f32
    %40 = vector.broadcast %cst_27 : f32 to vector<1x128xf32>
    %41 = arith.mulf %40, %37 : vector<1x128xf32>
    %42 = arith.select %39, %37, %41 : vector<1x128xi1>, vector<1x128xf32>
    %cst_28 = arith.constant dense<0.000000e+00> : vector<1x8xf32>
    %43 = tpu.matmul %42, %7, %cst_28 {dimension_numbers = #tpu.dot_dimension_numbers<[1], [0], [0], [1], [0, 0, 1, 1], [], []>} : vector<1x128xf32>, vector<128x8xf32>, vector<1x8xf32> -> vector<1x8xf32>
    %44 = arith.addf %43, %12 : vector<1x8xf32>
    %45 = vector.shape_cast %44 : vector<1x8xf32> to vector<1x1x8xf32>
    %c0_29 = arith.constant 0 : index
    %c0_30 = arith.constant 0 : index
    %c0_31 = arith.constant 0 : index
    %46 = vector.load %arg5[%c0_29, %c0_30, %c0_31] : memref<1x1x8xf32, #tpu.memory_space<vmem>>, vector<1x1x8xf32>
    tpu.vector_store %arg5[%c0_29, %c0_30, %c0_31], %45 {strides = array<i32>} : memref<1x1x8xf32, #tpu.memory_space<vmem>>, vector<1x1x8xf32>,
    return
  }
  func.func @transform_0(%arg0: i32) -> (i32, i32) {
    %c0_i32 = arith.constant 0 : i32
    %c0_i32_0 = arith.constant 0 : i32
    return %arg0, %c0_i32 : i32, i32
  }
  func.func @transform_1(%arg0: i32) -> (i32, i32) {
    %c0_i32 = arith.constant 0 : i32
    %c0_i32_0 = arith.constant 0 : i32
    return %arg0, %c0_i32 : i32, i32
  }
  func.func @transform_2(%arg0: i32) -> (i32, i32) {
    %c0_i32 = arith.constant 0 : i32
    %c0_i32_0 = arith.constant 0 : i32
    %c0_i32_1 = arith.constant 0 : i32
    return %c0_i32, %c0_i32_0 : i32, i32
  }
  func.func @transform_3(%arg0: i32) -> (i32, i32) {
    %c0_i32 = arith.constant 0 : i32
    %c0_i32_0 = arith.constant 0 : i32
    %c0_i32_1 = arith.constant 0 : i32
    return %c0_i32, %c0_i32_0 : i32, i32
  }
  func.func @transform_4(%arg0: i32) -> (i32, i32, i32) {
    %c0_i32 = arith.constant 0 : i32
    %c0_i32_0 = arith.constant 0 : i32
    %c0_i32_1 = arith.constant 0 : i32
    return %arg0, %c0_i32, %c0_i32_0 : i32, i32, i32
  }
}

</mosaic_0001>

<bundles_post_ra>
// kernel: critic_forward.1
= control target key start
LH: loop header
LB: loop body
LE: loop exit
PB: predicated region body
PF: predicated region fallthrough
CT: control target
= control target key end

     0   :  { %9 = vsyncpa [#allocation3], 0  ;;  %s1100_s0 = inlined_call_operand.vmem [shape: f32[1,96], index: 0, kind: input, shape index: {}]   ;;  %s1101_s1 = inlined_call_operand.vmem [shape: f32[1,32], index: 1, kind: input, shape index: {}]   ;;  %s1102_s2 = inlined_call_operand.hbm [shape: f32[512,128], index: 2, kind: input, shape index: {}]   ;;  %s1103_s3 = inlined_call_operand.hbm [shape: f32[40,128], index: 3, kind: input, shape index: {}]   ;;  %s1104_s4 = inlined_call_operand.hbm [shape: f32[1,1,8], index: 4, kind: output, shape index: {}]  }
   0x1   :  { %10 = vsyncpa [#allocation6], 0 }
   0x2   :  { %11 = vsyncpa [#allocation4], 0  ;;  %s979_s15 = smov [#allocation2]   ;;  %s907_s19 = scalar_lea.hbm %s1102_s2, 8192 }
   0x3   :  { %s21_s16 = sshll.u32 %s979_s15, 4  ;;  %p908_p0 = scmp.ne.s32.totalorder %s1102_s2, %s907_s19  ;;  %s22_s16 = int_to_ptr.vmem [resolvable:$true] %s21_s16 }
   0x4   :  { %p911_p1 = scmp.lt.u32.totalorder %s907_s19, %s1102_s2 }
   0x6   :  { %p913_p2 = pnand %p911_p1, %p908_p0 }
   0x8   :  { %916 = shalt.err (!%p913_p2)
}
   0x9   :  { %s917_s24 = scalar_lea.vmem %s22_s16, 8192  ;;  %p922_p4 = scmp.lt.s32.totalorder %s22_s16, %s22_s16 }
   0xa   :  { %p918_p3 = scmp.ne.s32.totalorder %s22_s16, %s917_s24  ;;  %p923_p5 = scmp.lt.s32.totalorder %s917_s24, %s917_s24 }
   0xc   :  { %p924_p6 = por %p923_p5, %p922_p4 }
   0xe   :  { %p925_p7 = pnand %p924_p6, %p918_p3 }
  0x10   :  { %928 = shalt.err (!%p925_p7)
}
  0x11   :  { %s980_s25 = smov 128   ;;  %s981_s26 = smov 8  }
  0x12   :  { %27 = dma.hbm_to_vmem [thread:$0]  %s1102_s2, 8192, %s22_s16, [#allocation3], %s980_s25, %s980_s25, %s981_s26  }
  0x13   :  { %s982_s29 = smov [#allocation5]   ;;  %s929_s7 = scalar_lea.hbm %s1103_s3, 640 }
  0x14   :  { %s33_s30 = sshll.u32 %s982_s29, 4  ;;  %p930_p8 = scmp.ne.s32.totalorder %s1103_s3, %s929_s7  ;;  %s34_s30 = int_to_ptr.vmem [resolvable:$true] %s33_s30 }
  0x15   :  { %p933_p9 = scmp.lt.u32.totalorder %s929_s7, %s1103_s3 }
  0x17   :  { %p935_p10 = pnand %p933_p9, %p930_p8 }
  0x19   :  { %938 = shalt.err (!%p935_p10)
}
  0x1a   :  { %s939_s12 = scalar_lea.vmem %s34_s30, 640  ;;  %p944_p12 = scmp.lt.s32.totalorder %s34_s30, %s34_s30 }
  0x1b   :  { %p940_p11 = scmp.ne.s32.totalorder %s34_s30, %s939_s12  ;;  %p945_p13 = scmp.lt.s32.totalorder %s939_s12, %s939_s12 }
  0x1d   :  { %p946_p0 = por %p945_p13, %p944_p12 }
  0x1f   :  { %p947_p1 = pnand %p946_p0, %p940_p11 }
  0x21   :  { %950 = shalt.err (!%p947_p1)
}
  0x22   :  { %39 = dma.hbm_to_vmem [thread:$0]  %s1103_s3, 640, %s34_s30, [#allocation6], %s980_s25, %s980_s25, %s981_s26  }
  0x23   :  { %973 = dma.done.wait [#allocation3], 8192  }
  0x24   :  { %974 = vsyncadd [#allocation3], 4294959104 }
  0x25   :  { %975 = dma.done.wait [#allocation6], 640  }
  0x26   :  { %976 = vsyncadd [#allocation6], 4294966656  ;;  %v983_v0 = vmov 0.0|0.0   ;;  %vm984_vm0 = vmmov 0   ;;  %v985_v1 = vmov 0.0   ;;  %v48_v2 = vld [vmem:[#allocation2] sm:$0xff] }
  0x27   :  { %803 = vmatprep.subr.bf16.mxu0 %v983_v0  ;;  %681 = vmatprep.mubr.msk.f32.mxu0 %vm984_vm0, %v985_v1  ;;  %v49_v3 = vld [vmem:[#allocation2 + $0x8] sm:$0xff]  ;;  %v50_v4 = vld [vmem:[#allocation2 + $0x10] sm:$0xff]  ;;  %v51_v6 = vld [vmem:[#allocation2 + $0x18] sm:$0xff]  ;;  %vm117_vm1 = vcmask 785408   ;;  %vm194_vm2 = vcmask 261120   ;;  %vm344_vm5 = vcmask 523264  }
  0x28   :  { %827 = vmatprep.subr.bf16.mxu1 %v983_v0  ;;  %727 = vmatprep.mubr.msk.f32.mxu1 %vm984_vm0, %v985_v1  ;;  %v804_v5 = vpack.c.bf16 %v49_v3, %v48_v2  ;;  %v807_v7 = vpack.c.bf16 %v51_v6, %v50_v4  ;;  %v52_v8 = vld [vmem:[#allocation2 + $0x20] sm:$0xff]  ;;  %v53_v9 = vld [vmem:[#allocation2 + $0x28] sm:$0xff]  ;;  %v66_v13 = vld [vmem:[#allocation2 + $0x90] sm:$0xff]  ;;  %vm565_vm8 = vcmask 57344  }
  0x29   :  { %v64_v10 = vld [vmem:[#allocation2 + $0x80] sm:$0xff]  ;;  %v65_v11 = vld [vmem:[#allocation2 + $0x88] sm:$0xff]  ;;  %v67_v14 = vld [vmem:[#allocation2 + $0x98] sm:$0xff]  ;;  %v810_v15 = vpack.c.bf16 %v53_v9, %v52_v8 }
  0x2a   :  { %805 = vmatpush3.bf16.msra.mxu0 %v804_v5  ;;  %v828_v12 = vpack.c.bf16 %v65_v11, %v64_v10  ;;  %v54_v16 = vld [vmem:[#allocation2 + $0x30] sm:$0xff]  ;;  %v831_v17 = vpack.c.bf16 %v67_v14, %v66_v13  ;;  %v55_v18 = vld [vmem:[#allocation2 + $0x38] sm:$0xff]  ;;  %v68_v19 = vld [vmem:[#allocation2 + $0xa0] sm:$0xff] }
  0x2b   :  { %806 = vmatprep.subr.bf16.mxu0 %v983_v0  ;;  %v69_v20 = vld [vmem:[#allocation2 + $0xa8] sm:$0xff]  ;;  %v813_v21 = vpack.c.bf16 %v55_v18, %v54_v16  ;;  %v56_v22 = vld [vmem:[#allocation2 + $0x40] sm:$0xff]  ;;  %v70_v25 = vld [vmem:[#allocation2 + $0xb0] sm:$0xff] }
  0x2c   :  { %829 = vmatpush3.bf16.msra.mxu1 %v828_v12  ;;  %v834_v23 = vpack.c.bf16 %v69_v20, %v68_v19  ;;  %v57_v24 = vld [vmem:[#allocation2 + $0x48] sm:$0xff]  ;;  %v71_v26 = vld [vmem:[#allocation2 + $0xb8] sm:$0xff]  ;;  %v58_v28 = vld [vmem:[#allocation2 + $0x50] sm:$0xff] }
  0x2d   :  { %830 = vmatprep.subr.bf16.mxu1 %v983_v0  ;;  %v816_v27 = vpack.c.bf16 %v57_v24, %v56_v22  ;;  %v837_v29 = vpack.c.bf16 %v71_v26, %v70_v25  ;;  %v59_v30 = vld [vmem:[#allocation2 + $0x58] sm:$0xff]  ;;  %v72_v31 = vld [vmem:[#allocation2 + $0xc0] sm:$0xff]  ;;  %v73_v32 = vld [vmem:[#allocation2 + $0xc8] sm:$0xff] }
  0x2e   :  { %808 = vmatpush3.bf16.msra.mxu0 %v807_v7  ;;  %v819_v33 = vpack.c.bf16 %v59_v30, %v58_v28  ;;  %v840_v34 = vpack.c.bf16 %v73_v32, %v72_v31  ;;  %v60_v35 = vld [vmem:[#allocation2 + $0x60] sm:$0xff]  ;;  %v61_v36 = vld [vmem:[#allocation2 + $0x68] sm:$0xff]  ;;  %v74_v37 = vld [vmem:[#allocation2 + $0xd0] sm:$0xff] }
  0x2f   :  { %809 = vmatprep.subr.bf16.mxu0 %v983_v0  ;;  %v75_v38 = vld [vmem:[#allocation2 + $0xd8] sm:$0xff]  ;;  %v46_v39 = vld [vmem:[%s1100_s0] sm:$0x1]  ;;  %v822_v40 = vpack.c.bf16 %v61_v36, %v60_v35  ;;  %v62_v41 = vld [vmem:[#allocation2 + $0x70] sm:$0xff] }
  0x30   :  { %832 = vmatpush3.bf16.msra.mxu1 %v831_v17  ;;  %v63_v42 = vld [vmem:[#allocation2 + $0x78] sm:$0xff]  ;;  %v843_v43 = vpack.c.bf16 %v75_v38, %v74_v37  ;;  %v76_v44 = vld [vmem:[#allocation2 + $0xe0] sm:$0xff]  ;;  %v77_v45 = vld [vmem:[#allocation2 + $0xe8] sm:$0xff] }
  0x31   :  { %833 = vmatprep.subr.bf16.mxu1 %v983_v0  ;;  %v825_v46 = vpack.c.bf16 %v63_v42, %v62_v41  ;;  %v846_v47 = vpack.c.bf16 %v77_v45, %v76_v44  ;;  %v47_v48 = vld [vmem:[%s1101_s1] sm:$0x1]  ;;  %v78_v49 = vld [vmem:[#allocation2 + $0xf0] sm:$0xff]  ;;  %v79_v50 = vld [vmem:[#allocation2 + $0xf8] sm:$0xff]  ;;  %s986_s1 = smov [#allocation7]  }
  0x32   :  { %811 = vmatpush3.bf16.msra.mxu0 %v810_v15  ;;  %v849_v51 = vpack.c.bf16 %v79_v50, %v78_v49  ;;  %v88_v52 = vld [vmem:[#allocation2 + $0x140] sm:$0xff]  ;;  %v89_v53 = vld [vmem:[#allocation2 + $0x148] sm:$0xff]  ;;  %v90_v54 = vld [vmem:[#allocation2 + $0x150] sm:$0xff]  ;;  %s573_s16 = sshll.u32 %s986_s1, 4  ;;  %s574_s16 = int_to_ptr.vmem [resolvable:$true] %s573_s16 }
  0x33   :  { %812 = vmatprep.subr.bf16.mxu0 %v983_v0  ;;  %v852_v55 = vpack.c.bf16 %v89_v53, %v88_v52  ;;  %v91_v56 = vld [vmem:[#allocation2 + $0x158] sm:$0xff]  ;;  %v92_v58 = vld [vmem:[#allocation2 + $0x160] sm:$0xff]  ;;  %v93_v59 = vld [vmem:[#allocation2 + $0x168] sm:$0xff]  ;;  %s951_s17 = scalar_lea.vmem %s574_s16, 16  ;;  %s955_s18 = scalar_lea.vmem %s574_s16, 32 }
  0x34   :  { %835 = vmatpush3.bf16.msra.mxu1 %v834_v23  ;;  %v855_v57 = vpack.c.bf16 %v91_v56, %v90_v54  ;;  %v858_v60 = vpack.c.bf16 %v93_v59, %v92_v58  ;;  %v94_v61 = vld [vmem:[#allocation2 + $0x170] sm:$0xff]  ;;  %v95_v62 = vld [vmem:[#allocation2 + $0x178] sm:$0xff]  ;;  %v112_v2 = vld [vmem:[#allocation5] sm:$0x1]  ;;  %p952_p2 = scmp.ne.s32.totalorder %s574_s16, %s951_s17  ;;  %p956_p3 = scmp.lt.s32.totalorder %s574_s16, %s574_s16 }
  0x35   :  { %836 = vmatprep.subr.bf16.mxu1 %v983_v0  ;;  %v861_v63 = vpack.c.bf16 %v95_v62, %v94_v61  ;;  %v113_v8 = vld [vmem:[#allocation5 + $0x8] sm:$0x1]  ;;  %v80_v10 = vld [vmem:[#allocation2 + $0x100] sm:$0xff]  ;;  %v82_v16 = vld [vmem:[#allocation2 + $0x110] sm:$0xff]  ;;  %p957_p4 = scmp.lt.s32.totalorder %s955_s18, %s951_s17 }
  0x36   :  { %814 = vmatpush3.bf16.msra.mxu0 %v813_v21  ;;  %v81_v11 = vld [vmem:[#allocation2 + $0x108] sm:$0xff]  ;;  %v83_v17 = vld [vmem:[#allocation2 + $0x118] sm:$0xff]  ;;  %v84_v20 = vld [vmem:[#allocation2 + $0x120] sm:$0xff] }
  0x37   :  { %815 = vmatprep.subr.bf16.mxu0 %v983_v0  ;;  %v864_v15 = vpack.c.bf16 %v81_v11, %v80_v10  ;;  %v867_v19 = vpack.c.bf16 %v83_v17, %v82_v16  ;;  %v85_v21 = vld [vmem:[#allocation2 + $0x128] sm:$0xff]  ;;  %v86_v23 = vld [vmem:[#allocation2 + $0x130] sm:$0xff]  ;;  %v87_v24 = vld [vmem:[#allocation2 + $0x138] sm:$0xff]  ;;  %p958_p5 = por %p957_p4, %p956_p3 }
  0x38   :  { %838 = vmatpush3.bf16.msra.mxu1 %v837_v29  ;;  %v870_v22 = vpack.c.bf16 %v85_v21, %v84_v20  ;;  %v873_v25 = vpack.c.bf16 %v87_v24, %v86_v23  ;;  %v96_v26 = vld [vmem:[#allocation2 + $0x180] sm:$0xff]  ;;  %v98_v28 = vld [vmem:[#allocation2 + $0x190] sm:$0xff]  ;;  %v101_v32 = vld [vmem:[#allocation2 + $0x1a8] sm:$0xff] }
  0x39   :  { %839 = vmatprep.subr.bf16.mxu1 %v983_v0  ;;  %v100_v31 = vld [vmem:[#allocation2 + $0x1a0] sm:$0xff]  ;;  %v103_v35 = vld [vmem:[#allocation2 + $0x1b8] sm:$0xff]  ;;  %v105_v38 = vld [vmem:[#allocation2 + $0x1c8] sm:$0xff]  ;;  %p959_p6 = pnand %p958_p5, %p952_p2 }
  0x3a   :  { %817 = vmatpush3.bf16.msra.mxu0 %v816_v27  ;;  %v97_v27 = vld [vmem:[#allocation2 + $0x188] sm:$0xff]  ;;  %v104_v37 = vld [vmem:[#allocation2 + $0x1c0] sm:$0xff]  ;;  %v107_v41 = vld [vmem:[#allocation2 + $0x1d8] sm:$0xff] }
  0x3b   :  { %818 = vmatprep.subr.bf16.mxu0 %v983_v0  ;;  %v876_v29 = vpack.c.bf16 %v97_v27, %v96_v26  ;;  %v109_v52 = vld [vmem:[#allocation2 + $0x1e8] sm:$0xff]  ;;  %v110_v54 = vld [vmem:[#allocation2 + $0x1f0] sm:$0xff] }
  0x3c   :  { %841 = vmatpush3.bf16.msra.mxu1 %v840_v34  ;;  %v102_v34 = vld [vmem:[#allocation2 + $0x1b0] sm:$0xff] }
  0x3d   :  { %842 = vmatprep.subr.bf16.mxu1 %v983_v0  ;;  %v885_v36 = vpack.c.bf16 %v103_v35, %v102_v34 }
  0x3e   :  { %820 = vmatpush3.bf16.msra.mxu0 %v819_v33  ;;  %v882_v33 = vpack.c.bf16 %v101_v32, %v100_v31 }
  0x3f   :  { %821 = vmatprep.subr.bf16.mxu0 %v983_v0 }
  0x40   :  { %844 = vmatpush3.bf16.msra.mxu1 %v843_v43  ;;  %v114_v43 = vld [vmem:[#allocation5 + $0x10] sm:$0x1] }
  0x41   :  { %682 = vmatmul.mubr.msk.f32.vlgmr.msra.gmra.mrb[0].mxu0 %vm117_vm1, %v46_v39  ;;  %845 = vmatprep.subr.bf16.mxu1 %v983_v0  ;;  %v888_v39 = vpack.c.bf16 %v105_v38, %v104_v37 }
  0x42   :  { %823 = vmatpush3.bf16.msra.mxu0 %v822_v40  ;;  %692 = vmatprep.mubr.msk.f32.mxu0 %vm984_vm0, %v985_v1  ;;  %v106_v40 = vld [vmem:[#allocation2 + $0x1d0] sm:$0xff] }
  0x43   :  { %824 = vmatprep.subr.bf16.mxu0 %v983_v0  ;;  %v891_v42 = vpack.c.bf16 %v107_v41, %v106_v40 }
  0x44   :  { %847 = vmatpush3.bf16.msra.mxu1 %v846_v47 }
  0x45   :  { %848 = vmatprep.subr.bf16.mxu1 %v983_v0 }
  0x46   :  { %826 = vmatpush3.bf16.msra.mxu0 %v825_v46 }
  0x47   :  { %851 = vmatprep.subr.bf16.mxu0 %v983_v0 }
  0x48   :  { %850 = vmatpush3.bf16.msra.mxu1 %v849_v51  ;;  %v108_v51 = vld [vmem:[#allocation2 + $0x1e0] sm:$0xff] }
  0x49   :  { %693 = vmatmul.mubr.msk.f32.vlgmr.msra.gmra.mrb[2].mxu0 %vm194_vm2, %v47_v48  ;;  %875 = vmatprep.subr.bf16.mxu1 %v983_v0  ;;  %v894_v53 = vpack.c.bf16 %v109_v52, %v108_v51 }
  0x4a   :  { %746 = vmatprep.mubr.msk.f32.mxu0 %vm984_vm0, %v985_v1  ;;  %853 = vmatpush3.bf16.msra.mxu0 %v852_v55  ;;  %v111_v55 = vld [vmem:[#allocation2 + $0x1f8] sm:$0xff] }
  0x4b   :  { %854 = vmatprep.subr.bf16.mxu0 %v983_v0  ;;  %v897_v56 = vpack.c.bf16 %v111_v55, %v110_v54 }
  0x4e   :  { %856 = vmatpush3.bf16.msra.mxu0 %v855_v57  ;;  %v115_v57 = vld [vmem:[#allocation5 + $0x18] sm:$0x1] }
  0x4f   :  { %857 = vmatprep.subr.bf16.mxu0 %v983_v0 }
  0x52   :  { %859 = vmatpush3.bf16.msra.mxu0 %v858_v60 }
  0x53   :  { %860 = vmatprep.subr.bf16.mxu0 %v983_v0 }
  0x56   :  { %862 = vmatpush3.bf16.msra.mxu0 %v861_v63 }
  0x57   :  { %863 = vmatprep.subr.bf16.mxu0 %v983_v0 }
 0x114   :  { %v187_v3 = vpop.f32.mrb[0].mxu0 }
 0x115   :  { %v188_v4 = vadd.f32 %v187_v3, %v112_v2  ;;  %v683_v5 = vpop.f32.mrb[1].mxu0  ;;  %v116_v2 = vld [vmem:[#allocation5 + $0x20] sm:$0x1] }
 0x117   :  { %v192_v6 = vmul.f32 0.01, %v188_v4  ;;  %vm191_vm3 = vcmp.gt.f32.partialorder %v188_v4, 0.0 }
 0x119   :  { %v193_v7 = vsel %vm191_vm3, %v188_v4, %v192_v6 }
 0x11a   :  { %728 = vmatmul.mubr.f32.vlgmr.msra.gmra.mrb[0].mxu1 %v193_v7 }
 0x11b   :  { %800 = vmatprep.mubr.msk.f32.mxu1 %vm984_vm0, %v985_v1  ;;  %877 = vmatpush3.bf16.msra.mxu1 %v876_v29 }
 0x11c   :  { %v264_v9 = vpop.f32.mrb[2].mxu0  ;;  %878 = vmatprep.subr.bf16.mxu1 %v983_v0 }
 0x11d   :  { %v265_v12 = vadd.f32 %v264_v9, %v113_v8  ;;  %v694_v13 = vpop.f32.mrb[3].mxu0 }
 0x11f   :  { %vm268_vm4 = vcmp.gt.f32.partialorder %v265_v12, 0.0  ;;  %v269_v14 = vmul.f32 0.01, %v265_v12 }
 0x121   :  { %v270_v18 = vsel %vm268_vm4, %v265_v12, %v269_v14 }
 0x122   :  { %747 = vmatmul.mubr.msk.f32.vlgmr.msra.gmra.mrb[4].mxu0 %vm344_vm5, %v270_v18 }
 0x123   :  { %865 = vmatpush3.bf16.msra.mxu0 %v864_v15  ;;  %765 = vmatprep.mubr.msk.f32.mxu0 %vm984_vm0, %v985_v1  ;;  %v99_v1 = vld [vmem:[#allocation2 + $0x198] sm:$0xff] }
 0x124   :  { %866 = vmatprep.subr.bf16.mxu0 %v983_v0  ;;  %v879_v30 = vpack.c.bf16 %v99_v1, %v98_v28 }
 0x126   :  { %880 = vmatpush3.bf16.msra.mxu1 %v879_v30 }
 0x127   :  { %868 = vmatpush3.bf16.msra.mxu0 %v867_v19  ;;  %881 = vmatprep.subr.bf16.mxu1 %v983_v0 }
 0x128   :  { %869 = vmatprep.subr.bf16.mxu0 %v983_v0 }
 0x12a   :  { %883 = vmatpush3.bf16.msra.mxu1 %v882_v33 }
 0x12b   :  { %871 = vmatpush3.bf16.msra.mxu0 %v870_v22  ;;  %884 = vmatprep.subr.bf16.mxu1 %v983_v0 }
 0x12c   :  { %872 = vmatprep.subr.bf16.mxu0 %v983_v0 }
 0x12e   :  { %886 = vmatpush3.bf16.msra.mxu1 %v885_v36 }
 0x12f   :  { %874 = vmatpush3.bf16.msra.mxu0 %v873_v25  ;;  %887 = vmatprep.subr.bf16.mxu1 %v983_v0 }
 0x132   :  { %889 = vmatpush3.bf16.msra.mxu1 %v888_v39 }
 0x133   :  { %890 = vmatprep.subr.bf16.mxu1 %v983_v0 }
 0x136   :  { %892 = vmatpush3.bf16.msra.mxu1 %v891_v42 }
 0x137   :  { %893 = vmatprep.subr.bf16.mxu1 %v983_v0 }
 0x13a   :  { %895 = vmatpush3.bf16.msra.mxu1 %v894_v53 }
 0x13b   :  { %896 = vmatprep.subr.bf16.mxu1 %v983_v0 }
 0x13e   :  { %898 = vmatpush3.bf16.msra.mxu1 %v897_v56 }
 0x1ed   :  { %v337_v44 = vpop.f32.mrb[0].mxu1 }
 0x1ee   :  { %v338_v45 = vadd.f32 %v337_v44, %v114_v43  ;;  %v729_v46 = vpop.f32.mrb[1].mxu1 }
 0x1f0   :  { %vm341_vm6 = vcmp.gt.f32.partialorder %v338_v45, 0.0  ;;  %v342_v47 = vmul.f32 0.01, %v338_v45 }
 0x1f2   :  { %v343_v48 = vsel %vm341_vm6, %v338_v45, %v342_v47 }
 0x1f3   :  { %766 = vmatmul.mubr.msk.f32.vlgmr.msra.gmra.mrb[6].mxu0 %vm344_vm5, %v343_v48 }
 0x1f5   :  { %v414_v49 = vpop.f32.mrb[4].mxu0 }
 0x1f6   :  { %v748_v50 = vpop.f32.mrb[5].mxu0 }
 0x2c6   :  { %v487_v58 = vpop.f32.mrb[6].mxu0 }
 0x2c7   :  { %v488_v59 = vadd.f32 %v487_v58, %v414_v49  ;;  %v767_v60 = vpop.f32.mrb[7].mxu0 }
 0x2c9   :  { %v491_v61 = vadd.f32 %v488_v59, %v115_v57 }
 0x2cb   :  { %v493_v62 = vmul.f32 0.01, %v491_v61  ;;  %vm492_vm7 = vcmp.gt.f32.partialorder %v491_v61, 0.0 }
 0x2cd   :  { %v494_v63 = vsel %vm492_vm7, %v491_v61, %v493_v62 }
 0x2ce   :  { %801 = vmatmul.mubr.f32.vlgmr.msra.gmra.mrb[2].mxu1 %v494_v63 }
 0x3a1   :  { %v561_v3 = vpop.f32.mrb[2].mxu1 }
 0x3a2   :  { %v562_v4 = vadd.f32 %v561_v3, %v116_v2  ;;  %v802_v0 = vpop.f32.mrb[3].mxu1 }
 0x3a4   :  { %566 = vst.msk [vmem:[#allocation7] sm:$0x1] %vm565_vm8, %v562_v4 }
 0x3a5   :  { %962 = shalt.err (!%p959_p6)
}
 0x3a6   :  { %s963_s21 = scalar_lea.hbm %s1104_s4, 16 }
 0x3a7   :  { %p964_p7 = scmp.ne.s32.totalorder %s1104_s4, %s963_s21  ;;  %p967_p8 = scmp.lt.u32.totalorder %s963_s21, %s1104_s4 }
 0x3a9   :  { %p969_p9 = pnand %p967_p8, %p964_p7 }
 0x3ab   :  { %972 = shalt.err (!%p969_p9)
}
 0x3ac   :  { %576 = dma.vmem_to_hbm [thread:$0]  %s574_s16, 16, %s1104_s4, [#allocation4]  }
 0x3ad   :  { %977 = dma.done.wait [#allocation4], 16  }
 0x3ae   :  { %978 = vsyncadd [#allocation4], 4294967280 }
 0x3af   :  { %580 = vsyncpa [#allocation3], 1 }
 0x3b0   :  { %581 = vsyncpa [#allocation6], 1 }
 0x3b1   :  { %582 = vsyncpa [#allocation4], 1 }

</bundles_post_ra>
